<compile_context>
chip_gen: v6e
topology: v6e:2x2x1
jax: 0.10.0
libtpu: 0.0.40
codegen_flags: <defaults>
</compile_context>

<pallas_src>
import jax
import jax.numpy as jnp
from jax.experimental import pallas as pl
from jax.experimental.pallas import tpu as pltpu


def _acostic_cat_kernel(acf1_ref, acf2_ref, out_ref):
    """out = concat(acf1, acf2) along the lane (last) axis, one store per tile."""
    out_ref[...] = jnp.concatenate([acf1_ref[...], acf2_ref[...]], axis=-1)


def _round_up(x: int, m: int) -> int:
    return ((x + m - 1) // m) * m


def _choose_row_tile(rows: int, d1: int, d2: int, itemsize: int) -> int:
    """Pick a row-tile size: big (HBM-bound pipelining) but VMEM-safe everywhere.

    VMEM accounting uses lane-padded widths (each block's last dim pads to a
    multiple of 128 lanes in VMEM) and double buffering for in/out tiles.
    """
    d_out = d1 + d2
    # Sublane granularity of the second-minor dim: f32 -> 8, bf16 -> 16, int8 -> 32.
    sublane = 8 * max(1, 4 // max(itemsize, 1))
    padded_widths = _round_up(d1, 128) + _round_up(d2, 128) + _round_up(d_out, 128)
    bytes_per_row = 2 * padded_widths * itemsize  # 2x for double buffering
    # ~12 MiB keeps us under v5e's 16 MiB scoped-VMEM default with headroom,
    # and comfortably under v6e/v7x scoped defaults.
    budget_bytes = 12 * 1024 * 1024
    ts = max(1, budget_bytes // bytes_per_row)
    ts = min(ts, 8192)
    if ts >= rows:
        # Full-array block: exempt from the sublane-multiple rule.
        return rows
    return max(sublane, (ts // sublane) * sublane)


def acostic_cat(acf1: jax.Array, acf2: jax.Array) -> jax.Array:
    """Pallas equivalent of torch.cat((acf1, acf2), dim=-1).

    acf1: (batch, seq, dim1)
    acf2: (batch, seq, dim2)
    returns: (batch, seq, dim1 + dim2)
    """
    assert acf1.shape[:2] == acf2.shape[:2], "batch/seq dims must match"
    assert acf1.dtype == acf2.dtype, "dtypes must match"
    b, s, d1 = acf1.shape
    d2 = acf2.shape[-1]
    d_out = d1 + d2
    rows = b * s

    # Row-major reshape is free: concat is purely per-row.
    x1 = acf1.reshape(rows, d1)
    x2 = acf2.reshape(rows, d2)

    ts = _choose_row_tile(rows, d1, d2, acf1.dtype.itemsize)
    n_tiles = pl.cdiv(rows, ts)

    out2d = pl.pallas_call(
        _acostic_cat_kernel,
        out_shape=jax.ShapeDtypeStruct((rows, d_out), acf1.dtype),
        grid_spec=pltpu.PrefetchScalarGridSpec(
            num_scalar_prefetch=0,
            grid=(n_tiles,),
            in_specs=[
                pl.BlockSpec((ts, d1), lambda i: (i, 0)),
                pl.BlockSpec((ts, d2), lambda i: (i, 0)),
            ],
            out_specs=pl.BlockSpec((ts, d_out), lambda i: (i, 0)),
        ),
        compiler_params=pltpu.CompilerParams(
            dimension_semantics=("parallel",),
        ),
    )(x1, x2)

    return out2d.reshape(b, s, d_out)


if __name__ == "__main__":
    key = jax.random.PRNGKey(0)
    k1, k2 = jax.random.split(key)

    batch, seq, dim1, dim2 = 2, 8, 32, 48
    acf1 = jax.random.normal(k1, (batch, seq, dim1), dtype=jnp.float32)
    acf2 = jax.random.normal(k2, (batch, seq, dim2), dtype=jnp.float32)

    out = acostic_cat(acf1, acf2)
    out = jax.block_until_ready(out)

    # Reference check against plain JAX concatenation.
    ref = jnp.concatenate([acf1, acf2], axis=-1)
    assert out.shape == (batch, seq, dim1 + dim2)
    assert out.dtype == acf1.dtype
    assert bool(jnp.array_equal(out, ref))

    print("KERNEL_OK")
</pallas_src>

<mosaic_0001>
module attributes {stable_mosaic.version = 11 : i64} {
  func.func @_acostic_cat_kernel(%arg0: i32, %arg1: memref<16x32xf32, #tpu.memory_space<vmem>>, %arg2: memref<16x48xf32, #tpu.memory_space<vmem>>, %arg3: memref<16x80xf32, #tpu.memory_space<vmem>>) attributes {dimension_semantics = [#tpu.dimension_semantics<parallel>], iteration_bounds = array<i64: 1>, scalar_prefetch = 0 : i64, scratch_operands = 0 : i64, tpu.core_type = #tpu.core_type<tc>, window_params = [{transform_indices = @transform_0, window_bounds = array<i64: 16, 32>}, {transform_indices = @transform_1, window_bounds = array<i64: 16, 48>}, {transform_indices = @transform_2, window_bounds = array<i64: 16, 80>}]} {
    %c0 = arith.constant 0 : index
    %c0_0 = arith.constant 0 : index
    %0 = vector.load %arg1[%c0, %c0_0] : memref<16x32xf32, #tpu.memory_space<vmem>>, vector<16x32xf32>
    %c0_1 = arith.constant 0 : index
    %c0_2 = arith.constant 0 : index
    %1 = vector.load %arg2[%c0_1, %c0_2] : memref<16x48xf32, #tpu.memory_space<vmem>>, vector<16x48xf32>
    %2 = tpu.concatenate %0, %1 in 1 : vector<16x32xf32>, vector<16x48xf32> -> vector<16x80xf32>
    %c0_3 = arith.constant 0 : index
    %c0_4 = arith.constant 0 : index
    %3 = vector.load %arg3[%c0_3, %c0_4] : memref<16x80xf32, #tpu.memory_space<vmem>>, vector<16x80xf32>
    tpu.vector_store %arg3[%c0_3, %c0_4], %2 {strides = array<i32>} : memref<16x80xf32, #tpu.memory_space<vmem>>, vector<16x80xf32>,
    return
  }
  func.func @transform_0(%arg0: i32) -> (i32, i32) {
    %c0_i32 = arith.constant 0 : i32
    %c0_i32_0 = arith.constant 0 : i32
    return %arg0, %c0_i32 : i32, i32
  }
  func.func @transform_1(%arg0: i32) -> (i32, i32) {
    %c0_i32 = arith.constant 0 : i32
    %c0_i32_0 = arith.constant 0 : i32
    return %arg0, %c0_i32 : i32, i32
  }
  func.func @transform_2(%arg0: i32) -> (i32, i32) {
    %c0_i32 = arith.constant 0 : i32
    %c0_i32_0 = arith.constant 0 : i32
    return %arg0, %c0_i32 : i32, i32
  }
}

</mosaic_0001>

<bundles_post_ra>
// kernel: tpu_custom_call.1
= control target key start
LH: loop header
LB: loop body
LE: loop exit
PB: predicated region body
PF: predicated region fallthrough
CT: control target
= control target key end

     0   :  { %7 = vsyncpa [#allocation3], 0  ;;  %s187_s0 = inlined_call_operand.hbm [shape: f32[16,32], index: 0, kind: input, shape index: {}]   ;;  %s188_s1 = inlined_call_operand.hbm [shape: f32[16,48], index: 1, kind: input, shape index: {}]   ;;  %s189_s2 = inlined_call_operand.hbm [shape: f32[16,80], index: 2, kind: output, shape index: {}]  }
   0x1   :  { %8 = vsyncpa [#allocation6], 0 }
   0x2   :  { %9 = vsyncpa [#allocation4], 0  ;;  %s148_s9 = smov [#allocation2]  }
   0x3   :  { %s15_s10 = sshll.u32 %s148_s9, 4  ;;  %s16_s10 = int_to_ptr.vmem [resolvable:$true] %s15_s10 }
   0x4   :  { %s90_s11 = scalar_lea.vmem %s16_s10, 256  ;;  %p95_p1 = scmp.lt.s32.totalorder %s16_s10, %s16_s10 }
   0x5   :  { %p91_p0 = scmp.ne.s32.totalorder %s16_s10, %s90_s11  ;;  %p96_p2 = scmp.lt.s32.totalorder %s90_s11, %s90_s11 }
   0x7   :  { %p97_p3 = por %p96_p2, %p95_p1 }
   0x9   :  { %p98_p4 = pnand %p97_p3, %p91_p0 }
   0xb   :  { %101 = shalt.err (!%p98_p4)
}
   0xc   :  { %s149_s12 = smov 128   ;;  %s150_s13 = smov 8  }
   0xd   :  { %21 = dma.hbm_to_vmem [thread:$0]  %s187_s0, 256, %s16_s10, [#allocation3], %s149_s12, %s149_s12, %s150_s13  }
   0xe   :  { %s151_s16 = smov [#allocation5]  }
   0xf   :  { %s27_s17 = sshll.u32 %s151_s16, 4  ;;  %s28_s17 = int_to_ptr.vmem [resolvable:$true] %s27_s17 }
  0x10   :  { %s110_s18 = scalar_lea.vmem %s28_s17, 256  ;;  %p115_p6 = scmp.lt.s32.totalorder %s28_s17, %s28_s17 }
  0x11   :  { %p111_p5 = scmp.ne.s32.totalorder %s28_s17, %s110_s18  ;;  %p116_p7 = scmp.lt.s32.totalorder %s110_s18, %s110_s18 }
  0x13   :  { %p117_p8 = por %p116_p7, %p115_p6 }
  0x15   :  { %p118_p9 = pnand %p117_p8, %p111_p5 }
  0x17   :  { %121 = shalt.err (!%p118_p9)
}
  0x18   :  { %33 = dma.hbm_to_vmem [thread:$0]  %s188_s1, 256, %s28_s17, [#allocation6], %s149_s12, %s149_s12, %s150_s13  }
  0x19   :  { %142 = dma.done.wait [#allocation3], 256  }
  0x1a   :  { %143 = vsyncadd [#allocation3], 4294967040 }
  0x1b   :  { %144 = dma.done.wait [#allocation6], 256  }
  0x1c   :  { %145 = vsyncadd [#allocation6], 4294967040  ;;  %v42_v0 = vld [vmem:[#allocation5] sm:$0xff]  ;;  %s152_s0 = smov 32   ;;  %v43_v1 = vld [vmem:[#allocation5 + $0x8] sm:$0xff]  ;;  %vm52_vm0 = vcmask 261120  }
  0x1d   :  { %46 = vrot.lane.b32.xlu0 %v42_v0, %s152_s0  ;;  %v40_v2 = vld [vmem:[#allocation2] sm:$0xff]  ;;  %vm55_vm1 = vcmask 654336   ;;  %s153_s21 = smov [#allocation7]   ;;  %v41_v5 = vld [vmem:[#allocation2 + $0x8] sm:$0xff] }
  0x1e   :  { %s63_s22 = sshll.u32 %s153_s21, 4  ;;  %s64_s22 = int_to_ptr.vmem [resolvable:$true] %s63_s22 }
  0x1f   :  { %s122_s1 = scalar_lea.vmem %s64_s22, 256  ;;  %p127_p11 = scmp.lt.s32.totalorder %s64_s22, %s64_s22 }
  0x20   :  { %p123_p10 = scmp.ne.s32.totalorder %s64_s22, %s122_s1  ;;  %p128_p12 = scmp.lt.s32.totalorder %s122_s1, %s122_s1 }
  0x21   :  { %48 = vrot.lane.b32.xlu0 %v43_v1, %s152_s0 }
  0x22   :  { %p129_p13 = por %p128_p12, %p127_p11 }
  0x24   :  { %p130_p0 = pnand %p129_p13, %p123_p10 }
  0x8f   :  { %v47_v3 = vpop.permute.xlu0 %46 }
  0x90   :  { %v53_v4 = vsel %vm52_vm0, %v40_v2, %v47_v3 }
  0x91   :  { %56 = vst.msk [vmem:[#allocation7] sm:$0xff] %vm55_vm1, %v53_v4 }
  0x93   :  { %v49_v6 = vpop.permute.xlu0 %48 }
  0x94   :  { %v54_v7 = vsel %vm52_vm0, %v41_v5, %v49_v6 }
  0x95   :  { %57 = vst.msk [vmem:[#allocation7 + $0x8] sm:$0xff] %vm55_vm1, %v54_v7 }
  0x96   :  { %133 = shalt.err (!%p130_p0)
}
  0x97   :  { %69 = dma.vmem_to_hbm [thread:$0]  %s64_s22, 256, %s189_s2, [#allocation4], %s149_s12, %s149_s12, %s150_s13  }
  0x98   :  { %146 = dma.done.wait [#allocation4], 256  }
  0x99   :  { %147 = vsyncadd [#allocation4], 4294967040 }
  0x9a   :  { %73 = vsyncpa [#allocation3], 1 }
  0x9b   :  { %74 = vsyncpa [#allocation6], 1 }
  0x9c   :  { %75 = vsyncpa [#allocation4], 1 }

</bundles_post_ra>
